<compile_context>
chip_gen: v7x
topology: tpu7x:2x2x1
jax: 0.10.0
libtpu: 0.0.40
codegen_flags: <defaults>
</compile_context>

<pallas_src>
import jax
import jax.numpy as jnp
from jax.experimental import pallas as pl
from jax.experimental.pallas import tpu as pltpu

LANE = 128
BN_EPS = 1e-5
MAX_TP = 4096


def _round_up(v, m):
    return ((v + m - 1) // m) * m


def _device_vmem_config():
    """(tiling budget bytes, vmem_limit_bytes) per TPU generation."""
    kind = ""
    try:
        kind = jax.devices()[0].device_kind.lower()
    except Exception:  # pragma: no cover - be robust on exotic backends
        pass
    if "v7" in kind or "7x" in kind:
        return 20 * 1024 * 1024, 32 * 1024 * 1024   # 64 MiB physical VMEM
    if "v6" in kind:
        return 26 * 1024 * 1024, 48 * 1024 * 1024   # 128 MiB physical VMEM
    if "v5" in kind:
        return 12 * 1024 * 1024, 16 * 1024 * 1024   # stay under scoped default
    return 12 * 1024 * 1024, 16 * 1024 * 1024       # unknown: conservative


def _tile_bytes_per_lane(c, dtype):
    """Bytes one lane-column of a (c, tp) VMEM tile really occupies (sublane pad)."""
    it = jnp.dtype(dtype).itemsize
    sub = 8 * max(1, 4 // it)          # f32 -> 8, bf16 -> 16, int8 -> 32 sublanes
    return _round_up(max(c, 1), sub) * it


def _pick_tp(hw, cx, cg, x_dtype, g_dtype, sxg_dtype, out_dtype, budget):
    """Largest 128-multiple lane tile fitting the double-buffered VMEM budget."""
    per_lane_a = 2 * (_tile_bytes_per_lane(cx, x_dtype)
                      + _tile_bytes_per_lane(cg, g_dtype)
                      + _tile_bytes_per_lane(2, sxg_dtype))
    per_lane_b = 2 * (_tile_bytes_per_lane(cx, x_dtype)
                      + _tile_bytes_per_lane(2, sxg_dtype)
                      + _tile_bytes_per_lane(cx, out_dtype))
    per_lane = max(per_lane_a, per_lane_b)
    cap = max(LANE, (budget // per_lane) // LANE * LANE)
    if hw < LANE:
        return hw                       # full-extent last dim (allowed when == array dim)
    return min(MAX_TP, (hw // LANE) * LANE, cap)


def _make_conv_kernel(tp, hw, cx, cg, accumulate):
    mask_tail = (hw % tp) != 0          # statically skip the mask on aligned shapes

    def _conv1x1_kernel(wx_ref, wg_ref, bias_ref, x_ref, g_ref, sxg_ref, psum_ref):
        """Both 1x1 convs (single output channel == per-pixel channel dot)."""
        t = pl.program_id(1)

        # Unrolled scalar*row FMAs (weights live in SMEM); stays on the VALU,
        # no padded weight tile, no XLU sublane reduce.
        sx = bias_ref[0] + wx_ref[0] * x_ref[0:1, :].astype(jnp.float32)
        for c in range(1, cx):
            sx = sx + wx_ref[c] * x_ref[c:c + 1, :].astype(jnp.float32)
        sg = bias_ref[1] + wg_ref[0] * g_ref[0:1, :].astype(jnp.float32)
        for c in range(1, cg):
            sg = sg + wg_ref[c] * g_ref[c:c + 1, :].astype(jnp.float32)

        sxg_ref[...] = jnp.concatenate([sx, sg], axis=0).astype(sxg_ref.dtype)

        # Training-mode BatchNorm batch statistics (f32).  Only mask when the
        # lane extent is ragged; the tail block's stores are masked by Pallas.
        if mask_tail:
            lane = jax.lax.broadcasted_iota(jnp.int32, (1, tp), 1)
            valid = (t * tp + lane) < hw
            sxm = jnp.where(valid, sx, 0.0)
            sgm = jnp.where(valid, sg, 0.0)
        else:
            sxm, sgm = sx, sg
        s0 = jnp.sum(sxm)
        s1 = jnp.sum(sxm * sxm)
        s2 = jnp.sum(sgm)
        s3 = jnp.sum(sgm * sgm)
        lr = jax.lax.broadcasted_iota(jnp.int32, (1, 128), 1)
        row = (jnp.where(lr == 0, s0, 0.0) + jnp.where(lr == 1, s1, 0.0) +
               jnp.where(lr == 2, s2, 0.0) + jnp.where(lr == 3, s3, 0.0))

        if accumulate:
            # psum block is resident across t (same block index); init at t==0,
            # written back to HBM only once per batch element.
            @pl.when(t == 0)
            def _():
                psum_ref[...] = jnp.zeros_like(psum_ref)
            psum_ref[...] += row
        else:
            psum_ref[...] = row

    return _conv1x1_kernel


def _att_kernel(p_ref, x_ref, sxg_ref, o_ref):
    """BN affine (batch stats folded) + ReLU + phi + sigmoid + gate."""
    # p_ref (SMEM): [scale_x, shift_x, scale_g, shift_g, phi_w, phi_b]
    sx = sxg_ref[0:1, :].astype(jnp.float32)
    sg = sxg_ref[1:2, :].astype(jnp.float32)
    ax = sx * p_ref[0] + p_ref[1]
    ag = sg * p_ref[2] + p_ref[3]
    att = jnp.maximum(ax + ag, 0.0)
    att = jax.nn.sigmoid(att * p_ref[4] + p_ref[5])
    o_ref[...] = (x_ref[...].astype(jnp.float32) * att).astype(o_ref.dtype)


def attblock_forward(x, g, params):
    N, Cx, H, W = x.shape
    _, Cg, _, _ = g.shape
    HW = H * W

    # bf16 intermediate only when the inputs are already 16-bit (halves its
    # HBM round-trip); f32 inputs keep an exact f32 intermediate.
    sxg_dtype = jnp.bfloat16 if jnp.dtype(x.dtype).itemsize <= 2 else jnp.float32

    budget, vmem_limit = _device_vmem_config()
    tp = _pick_tp(HW, Cx, Cg, x.dtype, g.dtype, sxg_dtype, x.dtype, budget)
    T = -(-HW // tp)
    # When N == 1, keep both grid axes "parallel" (v7x megacore) by emitting
    # per-tile psums; otherwise accumulate psums across T inside the kernel.
    accumulate = (N > 1) or (T == 1)

    # Free reshapes, no padding, no HBM copies; native dtype feeds the DMA.
    x3 = x.reshape(N, Cx, HW)
    g3 = g.reshape(N, Cg, HW)

    wx = params["wx_w"].reshape(Cx).astype(jnp.float32)     # Conv2d(Cx,1,1) weight
    wg = params["wg_w"].reshape(Cg).astype(jnp.float32)
    biases = jnp.stack([params["wx_b"][0], params["wg_b"][0]]).astype(jnp.float32)

    if accumulate:
        psum_shape = jax.ShapeDtypeStruct((N, 1, 128), jnp.float32)
        psum_spec = pl.BlockSpec((None, 1, 128), lambda n, t: (n, 0, 0))
        sem_a = ("parallel", "arbitrary")
    else:
        psum_shape = jax.ShapeDtypeStruct((N, T, 1, 128), jnp.float32)
        psum_spec = pl.BlockSpec((None, None, 1, 128), lambda n, t: (n, t, 0, 0))
        sem_a = ("parallel", "parallel")

    # --- Kernel A: both 1x1 convs + BN partial sums --------------------------
    sxg, psums = pl.pallas_call(
        _make_conv_kernel(tp, HW, Cx, Cg, accumulate),
        out_shape=(jax.ShapeDtypeStruct((N, 2, HW), sxg_dtype), psum_shape),
        grid=(N, T),
        in_specs=[
            pl.BlockSpec(memory_space=pltpu.MemorySpace.SMEM),            # wx (Cx,)
            pl.BlockSpec(memory_space=pltpu.MemorySpace.SMEM),            # wg (Cg,)
            pl.BlockSpec(memory_space=pltpu.MemorySpace.SMEM),            # biases (2,)
            pl.BlockSpec((None, Cx, tp), lambda n, t: (n, 0, t)),         # x tile
            pl.BlockSpec((None, Cg, tp), lambda n, t: (n, 0, t)),         # g tile
        ],
        out_specs=(
            pl.BlockSpec((None, 2, tp), lambda n, t: (n, 0, t)),          # packed sx/sg
            psum_spec,                                                    # BN partial sums
        ),
        compiler_params=pltpu.CompilerParams(
            dimension_semantics=sem_a, vmem_limit_bytes=vmem_limit),
    )(wx, wg, biases, x3, g3)

    # --- tiny JAX glue: finish BN batch stats, fold into scale/shift ---------
    count = float(N * HW)
    if accumulate:
        s = jnp.sum(psums[:, 0, 0:4], axis=0)           # [Σsx, Σsx², Σsg, Σsg²]
    else:
        s = jnp.sum(psums[:, :, 0, 0:4], axis=(0, 1))
    mx, mg = s[0] / count, s[2] / count
    vx = jnp.maximum(s[1] / count - mx * mx, 0.0)       # biased variance (PyTorch norm)
    vg = jnp.maximum(s[3] / count - mg * mg, 0.0)
    scale_x = params["bnx_g"][0] / jnp.sqrt(vx + BN_EPS)
    shift_x = params["bnx_b"][0] - mx * scale_x
    scale_g = params["bng_g"][0] / jnp.sqrt(vg + BN_EPS)
    shift_g = params["bng_b"][0] - mg * scale_g
    p_scalars = jnp.stack([scale_x, shift_x, scale_g, shift_g,
                           params["phi_w"].reshape(()),
                           params["phi_b"][0]]).astype(jnp.float32)

    # --- Kernel B: BN affine + ReLU + phi + sigmoid + gate -------------------
    out3 = pl.pallas_call(
        _att_kernel,
        out_shape=jax.ShapeDtypeStruct((N, Cx, HW), x.dtype),
        grid=(N, T),
        in_specs=[
            pl.BlockSpec(memory_space=pltpu.MemorySpace.SMEM),            # folded scalars
            pl.BlockSpec((None, Cx, tp), lambda n, t: (n, 0, t)),         # x tile
            pl.BlockSpec((None, 2, tp), lambda n, t: (n, 0, t)),          # sx/sg tile
        ],
        out_specs=pl.BlockSpec((None, Cx, tp), lambda n, t: (n, 0, t)),
        compiler_params=pltpu.CompilerParams(
            dimension_semantics=("parallel", "parallel"),
            vmem_limit_bytes=vmem_limit),
    )(p_scalars, x3, sxg)

    return out3.reshape(N, Cx, H, W)


def attblock_reference(x, g, params):
    """Pure-JAX replica of the PyTorch forward (training-mode BatchNorm)."""
    def conv1x1(inp, w, b):
        o, c = w.shape[0], w.shape[1]
        return jnp.einsum("nchw,oc->nohw", inp, w.reshape(o, c)) + b.reshape(1, -1, 1, 1)

    def bn_train(s, gamma, beta):
        m = jnp.mean(s, axis=(0, 2, 3), keepdims=True)
        v = jnp.mean((s - m) ** 2, axis=(0, 2, 3), keepdims=True)
        return (s - m) / jnp.sqrt(v + BN_EPS) * gamma.reshape(1, -1, 1, 1) + beta.reshape(1, -1, 1, 1)

    ax = bn_train(conv1x1(x, params["wx_w"], params["wx_b"]), params["bnx_g"], params["bnx_b"])
    ag = bn_train(conv1x1(g, params["wg_w"], params["wg_b"]), params["bng_g"], params["bng_b"])
    att = jax.nn.relu(ax + ag)
    att = jax.nn.sigmoid(conv1x1(att, params["phi_w"], params["phi_b"]))
    return x * att


def _make_params(key, x_dim, g_dim):
    ks = jax.random.split(key, 10)
    return {
        "wx_w": jax.random.normal(ks[0], (1, x_dim, 1, 1), jnp.float32) * 0.5,
        "wx_b": jax.random.normal(ks[1], (1,), jnp.float32) * 0.1,
        "bnx_g": 1.0 + 0.1 * jax.random.normal(ks[2], (1,), jnp.float32),
        "bnx_b": 0.1 * jax.random.normal(ks[3], (1,), jnp.float32),
        "wg_w": jax.random.normal(ks[4], (1, g_dim, 1, 1), jnp.float32) * 0.5,
        "wg_b": jax.random.normal(ks[5], (1,), jnp.float32) * 0.1,
        "bng_g": 1.0 + 0.1 * jax.random.normal(ks[6], (1,), jnp.float32),
        "bng_b": 0.1 * jax.random.normal(ks[7], (1,), jnp.float32),
        "phi_w": jax.random.normal(ks[8], (1, 1, 1, 1), jnp.float32) * 0.5,
        "phi_b": 0.1 * jax.random.normal(ks[9], (1,), jnp.float32),
    }


if __name__ == "__main__":
    fwd = jax.jit(attblock_forward)

    # Case 1: aligned spatial extent (HW % 128 == 0), N=2 -> accumulate path.
    N, x_dim, g_dim, H, W = 2, 4, 8, 16, 16
    k0, k1, k2 = jax.random.split(jax.random.PRNGKey(0), 3)
    params = _make_params(k0, x_dim, g_dim)
    x = jax.random.normal(k1, (N, x_dim, H, W), jnp.float32)
    g = jax.random.normal(k2, (N, g_dim, H, W), jnp.float32)
    out = jax.block_until_ready(fwd(x, g, params))
    ref = attblock_reference(x, g, params)
    assert out.shape == ref.shape == (N, x_dim, H, W)
    assert jnp.allclose(out, ref, atol=1e-4, rtol=1e-4), "mismatch (aligned case)"

    # Case 2: ragged spatial extent + N=1 (pad-free partial tail block, masked
    # BN sums, per-tile psum path with both grid axes parallel).
    N2, x_dim2, g_dim2, H2, W2 = 1, 3, 5, 11, 13
    k3, k4, k5 = jax.random.split(jax.random.PRNGKey(1), 3)
    params2 = _make_params(k3, x_dim2, g_dim2)
    x2 = jax.random.normal(k4, (N2, x_dim2, H2, W2), jnp.float32)
    g2 = jax.random.normal(k5, (N2, g_dim2, H2, W2), jnp.float32)
    out2 = jax.block_until_ready(fwd(x2, g2, params2))
    ref2 = attblock_reference(x2, g2, params2)
    assert out2.shape == ref2.shape == (N2, x_dim2, H2, W2)
    assert jnp.allclose(out2, ref2, atol=1e-4, rtol=1e-4), "mismatch (ragged case)"

    # TODO(synk): BatchNorm running_mean/running_var updates (training-time side
    # effect of the PyTorch module) are intentionally not replicated.
    print("KERNEL_OK")
</pallas_src>

<mosaic_0001>
module attributes {stable_mosaic.version = 11 : i64} {
  func.func @_conv1x1_kernel(%arg0: i32, %arg1: i32, %arg2: memref<4xf32, #tpu.memory_space<smem>>, %arg3: memref<8xf32, #tpu.memory_space<smem>>, %arg4: memref<2xf32, #tpu.memory_space<smem>>, %arg5: memref<1x4x256xf32, #tpu.memory_space<vmem>>, %arg6: memref<1x8x256xf32, #tpu.memory_space<vmem>>, %arg7: memref<1x2x256xf32, #tpu.memory_space<vmem>>, %arg8: memref<1x1x128xf32, #tpu.memory_space<vmem>>) attributes {dimension_semantics = [#tpu.dimension_semantics<parallel>, #tpu.dimension_semantics<arbitrary>], iteration_bounds = array<i64: 2, 1>, scalar_prefetch = 0 : i64, scratch_operands = 0 : i64, tpu.core_type = #tpu.core_type<tc>, window_params = [{transform_indices = @transform_0, window_bounds = array<i64: 4>}, {transform_indices = @transform_1, window_bounds = array<i64: 8>}, {transform_indices = @transform_2, window_bounds = array<i64: 2>}, {transform_indices = @transform_3, window_bounds = array<i64: 1, 4, 256>}, {transform_indices = @transform_4, window_bounds = array<i64: 1, 8, 256>}, {transform_indices = @transform_5, window_bounds = array<i64: 1, 2, 256>}, {transform_indices = @transform_6, window_bounds = array<i64: 1, 1, 128>}]} {
    %c0 = arith.constant 0 : index
    %0 = memref.load %arg4[%c0] : memref<2xf32, #tpu.memory_space<smem>>
    %c0_0 = arith.constant 0 : index
    %1 = memref.load %arg2[%c0_0] : memref<4xf32, #tpu.memory_space<smem>>
    %c0_1 = arith.constant 0 : index
    %c0_2 = arith.constant 0 : index
    %c0_3 = arith.constant 0 : index
    %2 = vector.load %arg5[%c0_1, %c0_2, %c0_3] : memref<1x4x256xf32, #tpu.memory_space<vmem>>, vector<1x1x256xf32>
    %3 = vector.shape_cast %2 : vector<1x1x256xf32> to vector<1x256xf32>
    %4 = vector.broadcast %1 : f32 to vector<1x256xf32>
    %5 = arith.mulf %4, %3 : vector<1x256xf32>
    %6 = vector.broadcast %0 : f32 to vector<1x256xf32>
    %7 = arith.addf %6, %5 : vector<1x256xf32>
    %c1 = arith.constant 1 : index
    %8 = memref.load %arg2[%c1] : memref<4xf32, #tpu.memory_space<smem>>
    %c0_4 = arith.constant 0 : index
    %c1_5 = arith.constant 1 : index
    %c0_6 = arith.constant 0 : index
    %9 = vector.load %arg5[%c0_4, %c1_5, %c0_6] : memref<1x4x256xf32, #tpu.memory_space<vmem>>, vector<1x1x256xf32>
    %10 = vector.shape_cast %9 : vector<1x1x256xf32> to vector<1x256xf32>
    %11 = vector.broadcast %8 : f32 to vector<1x256xf32>
    %12 = arith.mulf %11, %10 : vector<1x256xf32>
    %13 = arith.addf %7, %12 : vector<1x256xf32>
    %c2 = arith.constant 2 : index
    %14 = memref.load %arg2[%c2] : memref<4xf32, #tpu.memory_space<smem>>
    %c0_7 = arith.constant 0 : index
    %c2_8 = arith.constant 2 : index
    %c0_9 = arith.constant 0 : index
    %15 = vector.load %arg5[%c0_7, %c2_8, %c0_9] : memref<1x4x256xf32, #tpu.memory_space<vmem>>, vector<1x1x256xf32>
    %16 = vector.shape_cast %15 : vector<1x1x256xf32> to vector<1x256xf32>
    %17 = vector.broadcast %14 : f32 to vector<1x256xf32>
    %18 = arith.mulf %17, %16 : vector<1x256xf32>
    %19 = arith.addf %13, %18 : vector<1x256xf32>
    %c3 = arith.constant 3 : index
    %20 = memref.load %arg2[%c3] : memref<4xf32, #tpu.memory_space<smem>>
    %c0_10 = arith.constant 0 : index
    %c3_11 = arith.constant 3 : index
    %c0_12 = arith.constant 0 : index
    %21 = vector.load %arg5[%c0_10, %c3_11, %c0_12] : memref<1x4x256xf32, #tpu.memory_space<vmem>>, vector<1x1x256xf32>
    %22 = vector.shape_cast %21 : vector<1x1x256xf32> to vector<1x256xf32>
    %23 = vector.broadcast %20 : f32 to vector<1x256xf32>
    %24 = arith.mulf %23, %22 : vector<1x256xf32>
    %25 = arith.addf %19, %24 : vector<1x256xf32>
    %c1_13 = arith.constant 1 : index
    %26 = memref.load %arg4[%c1_13] : memref<2xf32, #tpu.memory_space<smem>>
    %c0_14 = arith.constant 0 : index
    %27 = memref.load %arg3[%c0_14] : memref<8xf32, #tpu.memory_space<smem>>
    %c0_15 = arith.constant 0 : index
    %c0_16 = arith.constant 0 : index
    %c0_17 = arith.constant 0 : index
    %28 = vector.load %arg6[%c0_15, %c0_16, %c0_17] : memref<1x8x256xf32, #tpu.memory_space<vmem>>, vector<1x1x256xf32>
    %29 = vector.shape_cast %28 : vector<1x1x256xf32> to vector<1x256xf32>
    %30 = vector.broadcast %27 : f32 to vector<1x256xf32>
    %31 = arith.mulf %30, %29 : vector<1x256xf32>
    %32 = vector.broadcast %26 : f32 to vector<1x256xf32>
    %33 = arith.addf %32, %31 : vector<1x256xf32>
    %c1_18 = arith.constant 1 : index
    %34 = memref.load %arg3[%c1_18] : memref<8xf32, #tpu.memory_space<smem>>
    %c0_19 = arith.constant 0 : index
    %c1_20 = arith.constant 1 : index
    %c0_21 = arith.constant 0 : index
    %35 = vector.load %arg6[%c0_19, %c1_20, %c0_21] : memref<1x8x256xf32, #tpu.memory_space<vmem>>, vector<1x1x256xf32>
    %36 = vector.shape_cast %35 : vector<1x1x256xf32> to vector<1x256xf32>
    %37 = vector.broadcast %34 : f32 to vector<1x256xf32>
    %38 = arith.mulf %37, %36 : vector<1x256xf32>
    %39 = arith.addf %33, %38 : vector<1x256xf32>
    %c2_22 = arith.constant 2 : index
    %40 = memref.load %arg3[%c2_22] : memref<8xf32, #tpu.memory_space<smem>>
    %c0_23 = arith.constant 0 : index
    %c2_24 = arith.constant 2 : index
    %c0_25 = arith.constant 0 : index
    %41 = vector.load %arg6[%c0_23, %c2_24, %c0_25] : memref<1x8x256xf32, #tpu.memory_space<vmem>>, vector<1x1x256xf32>
    %42 = vector.shape_cast %41 : vector<1x1x256xf32> to vector<1x256xf32>
    %43 = vector.broadcast %40 : f32 to vector<1x256xf32>
    %44 = arith.mulf %43, %42 : vector<1x256xf32>
    %45 = arith.addf %39, %44 : vector<1x256xf32>
    %c3_26 = arith.constant 3 : index
    %46 = memref.load %arg3[%c3_26] : memref<8xf32, #tpu.memory_space<smem>>
    %c0_27 = arith.constant 0 : index
    %c3_28 = arith.constant 3 : index
    %c0_29 = arith.constant 0 : index
    %47 = vector.load %arg6[%c0_27, %c3_28, %c0_29] : memref<1x8x256xf32, #tpu.memory_space<vmem>>, vector<1x1x256xf32>
    %48 = vector.shape_cast %47 : vector<1x1x256xf32> to vector<1x256xf32>
    %49 = vector.broadcast %46 : f32 to vector<1x256xf32>
    %50 = arith.mulf %49, %48 : vector<1x256xf32>
    %51 = arith.addf %45, %50 : vector<1x256xf32>
    %c4 = arith.constant 4 : index
    %52 = memref.load %arg3[%c4] : memref<8xf32, #tpu.memory_space<smem>>
    %c0_30 = arith.constant 0 : index
    %c4_31 = arith.constant 4 : index
    %c0_32 = arith.constant 0 : index
    %53 = vector.load %arg6[%c0_30, %c4_31, %c0_32] : memref<1x8x256xf32, #tpu.memory_space<vmem>>, vector<1x1x256xf32>
    %54 = vector.shape_cast %53 : vector<1x1x256xf32> to vector<1x256xf32>
    %55 = vector.broadcast %52 : f32 to vector<1x256xf32>
    %56 = arith.mulf %55, %54 : vector<1x256xf32>
    %57 = arith.addf %51, %56 : vector<1x256xf32>
    %c5 = arith.constant 5 : index
    %58 = memref.load %arg3[%c5] : memref<8xf32, #tpu.memory_space<smem>>
    %c0_33 = arith.constant 0 : index
    %c5_34 = arith.constant 5 : index
    %c0_35 = arith.constant 0 : index
    %59 = vector.load %arg6[%c0_33, %c5_34, %c0_35] : memref<1x8x256xf32, #tpu.memory_space<vmem>>, vector<1x1x256xf32>
    %60 = vector.shape_cast %59 : vector<1x1x256xf32> to vector<1x256xf32>
    %61 = vector.broadcast %58 : f32 to vector<1x256xf32>
    %62 = arith.mulf %61, %60 : vector<1x256xf32>
    %63 = arith.addf %57, %62 : vector<1x256xf32>
    %c6 = arith.constant 6 : index
    %64 = memref.load %arg3[%c6] : memref<8xf32, #tpu.memory_space<smem>>
    %c0_36 = arith.constant 0 : index
    %c6_37 = arith.constant 6 : index
    %c0_38 = arith.constant 0 : index
    %65 = vector.load %arg6[%c0_36, %c6_37, %c0_38] : memref<1x8x256xf32, #tpu.memory_space<vmem>>, vector<1x1x256xf32>
    %66 = vector.shape_cast %65 : vector<1x1x256xf32> to vector<1x256xf32>
    %67 = vector.broadcast %64 : f32 to vector<1x256xf32>
    %68 = arith.mulf %67, %66 : vector<1x256xf32>
    %69 = arith.addf %63, %68 : vector<1x256xf32>
    %c7 = arith.constant 7 : index
    %70 = memref.load %arg3[%c7] : memref<8xf32, #tpu.memory_space<smem>>
    %c0_39 = arith.constant 0 : index
    %c7_40 = arith.constant 7 : index
    %c0_41 = arith.constant 0 : index
    %71 = vector.load %arg6[%c0_39, %c7_40, %c0_41] : memref<1x8x256xf32, #tpu.memory_space<vmem>>, vector<1x1x256xf32>
    %72 = vector.shape_cast %71 : vector<1x1x256xf32> to vector<1x256xf32>
    %73 = vector.broadcast %70 : f32 to vector<1x256xf32>
    %74 = arith.mulf %73, %72 : vector<1x256xf32>
    %75 = arith.addf %69, %74 : vector<1x256xf32>
    %76 = tpu.concatenate %25, %75 in 0 : vector<1x256xf32>, vector<1x256xf32> -> vector<2x256xf32>
    %c0_42 = arith.constant 0 : index
    %c0_43 = arith.constant 0 : index
    %c0_44 = arith.constant 0 : index
    %77 = vector.load %arg7[%c0_42, %c0_43, %c0_44] : memref<1x2x256xf32, #tpu.memory_space<vmem>>, vector<1x2x256xf32>
    %78 = vector.shape_cast %77 : vector<1x2x256xf32> to vector<2x256xf32>
    %79 = vector.shape_cast %76 : vector<2x256xf32> to vector<1x2x256xf32>
    tpu.vector_store %arg7[%c0_42, %c0_43, %c0_44], %79 {strides = array<i32>} : memref<1x2x256xf32, #tpu.memory_space<vmem>>, vector<1x2x256xf32>,
    %80 = vector.shape_cast %25 : vector<1x256xf32> to vector<1x1x256xf32>
    %cst = arith.constant dense<0.000000e+00> : vector<1xf32>
    %81 = vector.multi_reduction <add>, %80, %cst [1, 2] : vector<1x1x256xf32> to vector<1xf32>
    %82 = vector.shape_cast %81 : vector<1xf32> to vector<1x1x1xf32>
    %83 = vector.extract %82[0, 0, 0] : f32 from vector<1x1x1xf32>
    %84 = arith.mulf %25, %25 : vector<1x256xf32>
    %85 = vector.shape_cast %84 : vector<1x256xf32> to vector<1x1x256xf32>
    %cst_45 = arith.constant dense<0.000000e+00> : vector<1xf32>
    %86 = vector.multi_reduction <add>, %85, %cst_45 [1, 2] : vector<1x1x256xf32> to vector<1xf32>
    %87 = vector.shape_cast %86 : vector<1xf32> to vector<1x1x1xf32>
    %88 = vector.extract %87[0, 0, 0] : f32 from vector<1x1x1xf32>
    %89 = vector.shape_cast %75 : vector<1x256xf32> to vector<1x1x256xf32>
    %cst_46 = arith.constant dense<0.000000e+00> : vector<1xf32>
    %90 = vector.multi_reduction <add>, %89, %cst_46 [1, 2] : vector<1x1x256xf32> to vector<1xf32>
    %91 = vector.shape_cast %90 : vector<1xf32> to vector<1x1x1xf32>
    %92 = vector.extract %91[0, 0, 0] : f32 from vector<1x1x1xf32>
    %93 = arith.mulf %75, %75 : vector<1x256xf32>
    %94 = vector.shape_cast %93 : vector<1x256xf32> to vector<1x1x256xf32>
    %cst_47 = arith.constant dense<0.000000e+00> : vector<1xf32>
    %95 = vector.multi_reduction <add>, %94, %cst_47 [1, 2] : vector<1x1x256xf32> to vector<1xf32>
    %96 = vector.shape_cast %95 : vector<1xf32> to vector<1x1x1xf32>
    %97 = vector.extract %96[0, 0, 0] : f32 from vector<1x1x1xf32>
    %98 = tpu.iota {dimensions = array<i32: 1>} : vector<1x128xi32>
    %c0_i32 = arith.constant 0 : i32
    %99 = vector.broadcast %c0_i32 : i32 to vector<1x128xi32>
    %100 = arith.cmpi eq, %98, %99 : vector<1x128xi32>
    %cst_48 = arith.constant 0.000000e+00 : f32
    %101 = vector.broadcast %83 : f32 to vector<1x128xf32>
    %102 = vector.broadcast %cst_48 : f32 to vector<1x128xf32>
    %103 = arith.select %100, %101, %102 : vector<1x128xi1>, vector<1x128xf32>
    %c1_i32 = arith.constant 1 : i32
    %104 = vector.broadcast %c1_i32 : i32 to vector<1x128xi32>
    %105 = arith.cmpi eq, %98, %104 : vector<1x128xi32>
    %cst_49 = arith.constant 0.000000e+00 : f32
    %106 = vector.broadcast %88 : f32 to vector<1x128xf32>
    %107 = vector.broadcast %cst_49 : f32 to vector<1x128xf32>
    %108 = arith.select %105, %106, %107 : vector<1x128xi1>, vector<1x128xf32>
    %109 = arith.addf %103, %108 : vector<1x128xf32>
    %c2_i32 = arith.constant 2 : i32
    %110 = vector.broadcast %c2_i32 : i32 to vector<1x128xi32>
    %111 = arith.cmpi eq, %98, %110 : vector<1x128xi32>
    %cst_50 = arith.constant 0.000000e+00 : f32
    %112 = vector.broadcast %92 : f32 to vector<1x128xf32>
    %113 = vector.broadcast %cst_50 : f32 to vector<1x128xf32>
    %114 = arith.select %111, %112, %113 : vector<1x128xi1>, vector<1x128xf32>
    %115 = arith.addf %109, %114 : vector<1x128xf32>
    %c3_i32 = arith.constant 3 : i32
    %116 = vector.broadcast %c3_i32 : i32 to vector<1x128xi32>
    %117 = arith.cmpi eq, %98, %116 : vector<1x128xi32>
    %cst_51 = arith.constant 0.000000e+00 : f32
    %118 = vector.broadcast %97 : f32 to vector<1x128xf32>
    %119 = vector.broadcast %cst_51 : f32 to vector<1x128xf32>
    %120 = arith.select %117, %118, %119 : vector<1x128xi1>, vector<1x128xf32>
    %121 = arith.addf %115, %120 : vector<1x128xf32>
    %c0_i32_52 = arith.constant 0 : i32
    %122 = arith.cmpi eq, %arg1, %c0_i32_52 : i32
    %123 = arith.extui %122 : i1 to i32
    %c0_i32_53 = arith.constant 0 : i32
    %124 = arith.cmpi ne, %123, %c0_i32_53 : i32
    scf.if %124 {
      %cst_60 = arith.constant 0.000000e+00 : f32
      %131 = vector.broadcast %cst_60 : f32 to vector<1x128xf32>
      %c0_61 = arith.constant 0 : index
      %c0_62 = arith.constant 0 : index
      %c0_63 = arith.constant 0 : index
      %132 = vector.load %arg8[%c0_61, %c0_62, %c0_63] : memref<1x1x128xf32, #tpu.memory_space<vmem>>, vector<1x1x128xf32>
      %133 = vector.shape_cast %132 : vector<1x1x128xf32> to vector<1x128xf32>
      %134 = vector.shape_cast %131 : vector<1x128xf32> to vector<1x1x128xf32>
      tpu.vector_store %arg8[%c0_61, %c0_62, %c0_63], %134 {strides = array<i32>} : memref<1x1x128xf32, #tpu.memory_space<vmem>>, vector<1x1x128xf32>,
    } else {
    }
    %c0_54 = arith.constant 0 : index
    %c0_55 = arith.constant 0 : index
    %c0_56 = arith.constant 0 : index
    %125 = vector.load %arg8[%c0_54, %c0_55, %c0_56] : memref<1x1x128xf32, #tpu.memory_space<vmem>>, vector<1x1x128xf32>
    %126 = vector.shape_cast %125 : vector<1x1x128xf32> to vector<1x128xf32>
    %127 = arith.addf %126, %121 : vector<1x128xf32>
    %c0_57 = arith.constant 0 : index
    %c0_58 = arith.constant 0 : index
    %c0_59 = arith.constant 0 : index
    %128 = vector.load %arg8[%c0_57, %c0_58, %c0_59] : memref<1x1x128xf32, #tpu.memory_space<vmem>>, vector<1x1x128xf32>
    %129 = vector.shape_cast %128 : vector<1x1x128xf32> to vector<1x128xf32>
    %130 = vector.shape_cast %127 : vector<1x128xf32> to vector<1x1x128xf32>
    tpu.vector_store %arg8[%c0_57, %c0_58, %c0_59], %130 {strides = array<i32>} : memref<1x1x128xf32, #tpu.memory_space<vmem>>, vector<1x1x128xf32>,
    return
  }
  func.func @transform_0(%arg0: i32, %arg1: i32) -> i32 {
    %c0_i32 = arith.constant 0 : i32
    %c0_i32_0 = arith.constant 0 : i32
    return %c0_i32 : i32
  }
  func.func @transform_1(%arg0: i32, %arg1: i32) -> i32 {
    %c0_i32 = arith.constant 0 : i32
    %c0_i32_0 = arith.constant 0 : i32
    return %c0_i32 : i32
  }
  func.func @transform_2(%arg0: i32, %arg1: i32) -> i32 {
    %c0_i32 = arith.constant 0 : i32
    %c0_i32_0 = arith.constant 0 : i32
    return %c0_i32 : i32
  }
  func.func @transform_3(%arg0: i32, %arg1: i32) -> (i32, i32, i32) {
    %c0_i32 = arith.constant 0 : i32
    %c0_i32_0 = arith.constant 0 : i32
    return %arg0, %c0_i32, %arg1 : i32, i32, i32
  }
  func.func @transform_4(%arg0: i32, %arg1: i32) -> (i32, i32, i32) {
    %c0_i32 = arith.constant 0 : i32
    %c0_i32_0 = arith.constant 0 : i32
    return %arg0, %c0_i32, %arg1 : i32, i32, i32
  }
  func.func @transform_5(%arg0: i32, %arg1: i32) -> (i32, i32, i32) {
    %c0_i32 = arith.constant 0 : i32
    %c0_i32_0 = arith.constant 0 : i32
    return %arg0, %c0_i32, %arg1 : i32, i32, i32
  }
  func.func @transform_6(%arg0: i32, %arg1: i32) -> (i32, i32, i32) {
    %c0_i32 = arith.constant 0 : i32
    %c0_i32_0 = arith.constant 0 : i32
    %c0_i32_1 = arith.constant 0 : i32
    return %arg0, %c0_i32, %c0_i32_0 : i32, i32, i32
  }
}

module attributes {stable_mosaic.version = 11 : i64} {
  func.func @_att_kernel(%arg0: i32, %arg1: i32, %arg2: memref<6xf32, #tpu.memory_space<smem>>, %arg3: memref<1x4x256xf32, #tpu.memory_space<vmem>>, %arg4: memref<1x2x256xf32, #tpu.memory_space<vmem>>, %arg5: memref<1x4x256xf32, #tpu.memory_space<vmem>>) attributes {dimension_semantics = [#tpu.dimension_semantics<parallel>, #tpu.dimension_semantics<parallel>], iteration_bounds = array<i64: 2, 1>, scalar_prefetch = 0 : i64, scratch_operands = 0 : i64, tpu.core_type = #tpu.core_type<tc>, window_params = [{transform_indices = @transform_0, window_bounds = array<i64: 6>}, {transform_indices = @transform_1, window_bounds = array<i64: 1, 4, 256>}, {transform_indices = @transform_2, window_bounds = array<i64: 1, 2, 256>}, {transform_indices = @transform_3, window_bounds = array<i64: 1, 4, 256>}]} {
    %c0 = arith.constant 0 : index
    %c0_0 = arith.constant 0 : index
    %c0_1 = arith.constant 0 : index
    %0 = vector.load %arg4[%c0, %c0_0, %c0_1] : memref<1x2x256xf32, #tpu.memory_space<vmem>>, vector<1x1x256xf32>
    %1 = vector.shape_cast %0 : vector<1x1x256xf32> to vector<1x256xf32>
    %c0_2 = arith.constant 0 : index
    %c1 = arith.constant 1 : index
    %c0_3 = arith.constant 0 : index
    %2 = vector.load %arg4[%c0_2, %c1, %c0_3] : memref<1x2x256xf32, #tpu.memory_space<vmem>>, vector<1x1x256xf32>
    %3 = vector.shape_cast %2 : vector<1x1x256xf32> to vector<1x256xf32>
    %c0_4 = arith.constant 0 : index
    %4 = memref.load %arg2[%c0_4] : memref<6xf32, #tpu.memory_space<smem>>
    %5 = vector.broadcast %4 : f32 to vector<1x256xf32>
    %6 = arith.mulf %1, %5 : vector<1x256xf32>
    %c1_5 = arith.constant 1 : index
    %7 = memref.load %arg2[%c1_5] : memref<6xf32, #tpu.memory_space<smem>>
    %8 = vector.broadcast %7 : f32 to vector<1x256xf32>
    %9 = arith.addf %6, %8 : vector<1x256xf32>
    %c2 = arith.constant 2 : index
    %10 = memref.load %arg2[%c2] : memref<6xf32, #tpu.memory_space<smem>>
    %11 = vector.broadcast %10 : f32 to vector<1x256xf32>
    %12 = arith.mulf %3, %11 : vector<1x256xf32>
    %c3 = arith.constant 3 : index
    %13 = memref.load %arg2[%c3] : memref<6xf32, #tpu.memory_space<smem>>
    %14 = vector.broadcast %13 : f32 to vector<1x256xf32>
    %15 = arith.addf %12, %14 : vector<1x256xf32>
    %16 = arith.addf %9, %15 : vector<1x256xf32>
    %cst = arith.constant 0.000000e+00 : f32
    %17 = vector.broadcast %cst : f32 to vector<1x256xf32>
    %18 = arith.maximumf %16, %17 : vector<1x256xf32>
    %c4 = arith.constant 4 : index
    %19 = memref.load %arg2[%c4] : memref<6xf32, #tpu.memory_space<smem>>
    %20 = vector.broadcast %19 : f32 to vector<1x256xf32>
    %21 = arith.mulf %18, %20 : vector<1x256xf32>
    %c5 = arith.constant 5 : index
    %22 = memref.load %arg2[%c5] : memref<6xf32, #tpu.memory_space<smem>>
    %23 = vector.broadcast %22 : f32 to vector<1x256xf32>
    %24 = arith.addf %21, %23 : vector<1x256xf32>
    %25 = arith.negf %24 : vector<1x256xf32>
    %26 = math.exp %25 : vector<1x256xf32>
    %cst_6 = arith.constant 1.000000e+00 : f32
    %27 = vector.broadcast %cst_6 : f32 to vector<1x256xf32>
    %28 = arith.addf %27, %26 : vector<1x256xf32>
    %29 = arith.divf %27, %28 : vector<1x256xf32>
    %c0_7 = arith.constant 0 : index
    %c0_8 = arith.constant 0 : index
    %c0_9 = arith.constant 0 : index
    %30 = vector.load %arg3[%c0_7, %c0_8, %c0_9] : memref<1x4x256xf32, #tpu.memory_space<vmem>>, vector<1x4x256xf32>
    %31 = vector.shape_cast %30 : vector<1x4x256xf32> to vector<4x256xf32>
    %32 = vector.broadcast %29 : vector<1x256xf32> to vector<4x256xf32>
    %33 = arith.mulf %31, %32 : vector<4x256xf32>
    %c0_10 = arith.constant 0 : index
    %c0_11 = arith.constant 0 : index
    %c0_12 = arith.constant 0 : index
    %34 = vector.load %arg5[%c0_10, %c0_11, %c0_12] : memref<1x4x256xf32, #tpu.memory_space<vmem>>, vector<1x4x256xf32>
    %35 = vector.shape_cast %34 : vector<1x4x256xf32> to vector<4x256xf32>
    %36 = vector.shape_cast %33 : vector<4x256xf32> to vector<1x4x256xf32>
    tpu.vector_store %arg5[%c0_10, %c0_11, %c0_12], %36 {strides = array<i32>} : memref<1x4x256xf32, #tpu.memory_space<vmem>>, vector<1x4x256xf32>,
    return
  }
  func.func @transform_0(%arg0: i32, %arg1: i32) -> i32 {
    %c0_i32 = arith.constant 0 : i32
    %c0_i32_0 = arith.constant 0 : i32
    return %c0_i32 : i32
  }
  func.func @transform_1(%arg0: i32, %arg1: i32) -> (i32, i32, i32) {
    %c0_i32 = arith.constant 0 : i32
    %c0_i32_0 = arith.constant 0 : i32
    return %arg0, %c0_i32, %arg1 : i32, i32, i32
  }
  func.func @transform_2(%arg0: i32, %arg1: i32) -> (i32, i32, i32) {
    %c0_i32 = arith.constant 0 : i32
    %c0_i32_0 = arith.constant 0 : i32
    return %arg0, %c0_i32, %arg1 : i32, i32, i32
  }
  func.func @transform_3(%arg0: i32, %arg1: i32) -> (i32, i32, i32) {
    %c0_i32 = arith.constant 0 : i32
    %c0_i32_0 = arith.constant 0 : i32
    return %arg0, %c0_i32, %arg1 : i32, i32, i32
  }
}

</mosaic_0001>

<bundles_post_ra>
// kernel: attblock_forward.2
= control target key start
LH: loop header
LB: loop body
LE: loop exit
PB: predicated region body
PF: predicated region fallthrough
CT: control target
= control target key end

     0   :  { %12 = vsyncpa [#allocation3], 0  ;;  %s1130_s0 = inlined_call_operand.vmem [shape: f32[4], index: 0, kind: input, shape index: {}]   ;;  %s1131_s1 = inlined_call_operand.vmem [shape: f32[8], index: 1, kind: input, shape index: {}]   ;;  %s1132_s2 = inlined_call_operand.vmem [shape: f32[2], index: 2, kind: input, shape index: {}]   ;;  %s1133_s3 = inlined_call_operand.vmem [shape: f32[2,4,256], index: 3, kind: input, shape index: {}]   ;;  %s1134_s4 = inlined_call_operand.vmem [shape: f32[2,8,256], index: 4, kind: input, shape index: {}]   ;;  %s1135_s5 = inlined_call_operand.vmem [shape: f32[2,2,256], index: 5, kind: output, shape index: {0}]   ;;  %s1136_s6 = inlined_call_operand.vmem [shape: f32[2,1,128], index: 6, kind: output, shape index: {1}]  }
   0x1   :  { %13 = vsyncpa [#allocation5], 0  ;;  %s968_s21 = smov 0   ;;  %s970_s22 = smov 0  }
   0x2   :  { %s972_s23 = smov 0  }
   0x3 LB: > { %s233_s26 = sshll.u32 %s1131_s1, 4  ;;  %s744_s27 = sadd.s32 4294967295, %s927_s23   ;;  %s927_s23 = sphi %s972_s23, %s19_s23   ;;  %s923_s22 = sphi %s970_s22, %s1147_s22   ;;  %s919_s21 = sphi %s968_s21, %s1146_s21   ;;  %s234_s26 = int_to_ptr.vmem [resolvable:$true] %s233_s26 }
   0x4   : > { %p746_p0 = scmp.ge.s32.totalorder %s927_s23, 1  ;;  %p209_p1 = scmp.lt.s32.totalorder %s927_s23, 3 }
   0x5   : > { %p989_p2 = scmp.eq.s32.totalorder %s744_s27, 0  ;;  %s31_s30 = sadd.s32 1, %s923_s22 }
   0x6   : > { %p993_p3 = pnand %p746_p0, %p209_p1  ;;  %s222_s9 = sshll.u32 %s1130_s0, 4  ;;  %s223_s9 = int_to_ptr.vmem [resolvable:$true] %s222_s9 }
   0x7   : > { %s1140_s28 = scalar_select %p989_p2, 1, 0 }
   0x8   : > { %s1141_s29 = scalar_select %p993_p3, 1, 0 }
   0x9   : > { %p808_p4 = pneg %p993_p3  ;;  %p1009_p6 = scmp.ge.s32.totalorder %s31_s30, 2 }
   0xa   : > { %s244_s14 = sshll.u32 %s1132_s2, 4  ;;  %s852_s15 = scalar_lea.vmem %s234_s26, 16  ;;  %s245_s14 = int_to_ptr.vmem [resolvable:$true] %s244_s14 }
   0xb   : > { %p1005_p5 = pnand %p989_p2, %p808_p4  ;;  %p853_p7 = scmp.ne.s32.totalorder %s234_s26, %s852_s15 }
   0xc   : > { %p860_p11 = scmp.lt.s32.totalorder %s234_s26, %s234_s26  ;;  %p861_p12 = scmp.lt.s32.totalorder %s852_s15, %s852_s15 }
   0xd   : > { %p854_p8 = pneg %p1005_p5 }
   0xe   : > { %p862_p13 = por %p861_p12, %p860_p11 }
   0xf   : > { %p855_p9 = pnand %p854_p8, %p853_p7 }
  0x11   : > { %p856_p10 = pneg %p855_p9 }
  0x13   : > { %p863_p0 = pnand %p862_p13, %p856_p10 }
  0x15   : > { %866 = shalt.err (!%p863_p0)
}
  0x16   : > { %s929_s16 = smov [#allocation4]   ;;  %s1149_s30 = smov (%p1009_p6, %s31_s30), 0 }
  0x17   : > { %814 = dma.vmem_to_smem (!%p1005_p5), %s234_s26, 16, %s929_s16, [#allocation5]  }
  0x18   : > { %s867_s17 = scalar_lea.vmem %s223_s9, 16  ;;  %p875_p9 = scmp.lt.s32.totalorder %s223_s9, %s223_s9 }
  0x19   : > { %p868_p1 = scmp.ne.s32.totalorder %s223_s9, %s867_s17  ;;  %p876_p2 = scmp.lt.s32.totalorder %s867_s17, %s867_s17 }
  0x1b   : > { %p870_p4 = pnand %p868_p1, %p854_p8  ;;  %p877_p11 = por %p876_p2, %p875_p9 }
  0x1d   : > { %p871_p7 = pneg %p870_p4 }
  0x1f   : > { %p878_p10 = pnand %p877_p11, %p871_p7 }
  0x21   : > { %881 = shalt.err (!%p878_p10)
}
  0x22   : > { %s930_s18 = smov [#allocation2]   ;;  %s882_s19 = scalar_lea.vmem %s245_s14, 16 }
  0x23   : > { %811 = dma.vmem_to_smem (!%p1005_p5), %s223_s9, 16, %s930_s18, [#allocation3]  }
  0x24   : > { %p883_p6 = scmp.ne.s32.totalorder %s245_s14, %s882_s19  ;;  %p890_p0 = scmp.lt.s32.totalorder %s245_s14, %s245_s14 }
  0x25   : > { %p891_p1 = scmp.lt.s32.totalorder %s882_s19, %s882_s19 }
  0x26   : > { %p885_p12 = pnand %p883_p6, %p854_p8 }
  0x27   : > { %p892_p4 = por %p891_p1, %p890_p0 }
  0x28   : > { %p886_p13 = pneg %p885_p12 }
  0x2a   : > { %p893_p3 = pnand %p892_p4, %p886_p13 }
  0x2c   : > { %896 = shalt.err (!%p893_p3)
}
  0x2d   : > { %s931_s20 = smov [#allocation6]   ;;  %p1144_p2 = scmp.ne.s32.totalorder %s1141_s29, 0 }
  0x2e   : > { %817 = dma.vmem_to_smem (!%p1005_p5), %s245_s14, 16, %s931_s20, [#allocation5]  }
  0x2f   : > { %283 = sbr.rel (%p1144_p2) target bundleno = 310 (0x136), region = 40  ;;  %p1145_p7 = scmp.ne.s32.totalorder (!%p1144_p2), %s1140_s28, 0 }
  0x36   : > { %910 = dma.done.wait (%p1145_p7), [#allocation3], 16  }
  0x37   : > { %912 = vsyncadd (%p1145_p7), [#allocation3], 4294967280 }
  0x38   : > { %914 = dma.done.wait (%p1145_p7), [#allocation5], 32  }
  0x39   : > { %916 = vsyncadd (%p1145_p7), [#allocation5], 4294967264 }
  0x3a   : > { %297 = sfence }
  0x3b   : > { %p343_p3 = scmp.lt.s32.totalorder %s919_s21, 1  ;;  %s375_s24 = sld [smem:[#allocation6]]  ;;  %v450_v0 = vlaneseq  ;;  %vm471_vm0 = vcmask 1040384  }
  0x3c   : > { %s376_s25 = sld [smem:[#allocation2]]  ;;  %s761_s26 = sld [smem:[#allocation2 + $0x1]] }
  0x3d   : > { %s1151_s21 = smov (!%p343_p3, %s919_s21), 1  ;;  %s763_s27 = sld [smem:[#allocation2 + $0x2]]  ;;  %v451_v12 = vshrl.u32 %v450_v0, 7 }
  0x3e   : > { %s765_s29 = sld [smem:[#allocation2 + $0x3]]  ;;  %s785_s7 = sshll.u32 %s1151_s21, 3 }
  0x3f   : > { %s350_s10 = scalar_lea.vmem %s1133_s3, %s785_s7  ;;  %s786_s28 = sshll.u32 %s1151_s21, 4  ;;  %v1068_v17 = vsub.s32 0, %v451_v12  ;;  %v1071_v20 = vsub.s32 1, %v451_v12 }
  0x40   : > { %v377_v1 = vld [vmem:[%s350_s10] ss:$4 sm:$0x3]  ;;  %v762_v2 = vld [vmem:[%s350_s10 + $0x1] ss:$4 sm:$0x3]  ;;  %s1062_s14 = scalar_lea.vmem %s1134_s4, %s786_s28 }
  0x41   : > { %v380_v4 = vstv %s375_s24  ;;  %v764_v6 = vld [vmem:[%s350_s10 + $0x2] ss:$4 sm:$0x3]  ;;  %s1056_s11 = sld [smem:[#allocation6 + $0x1]]  ;;  %s401_s15 = sld [smem:[#allocation4]] }
  0x42   : > { %v378_v3 = vstv %s376_s25  ;;  %v385_v5 = vstv %s761_s26  ;;  %v766_v10 = vld [vmem:[%s350_s10 + $0x3] ss:$4 sm:$0x3]  ;;  %s768_s16 = sld [smem:[#allocation4 + $0x1]]  ;;  %s770_s17 = sld [smem:[#allocation4 + $0x2]] }
  0x43   : > { %v379_v7 = vmul.f32 %v378_v3, %v377_v1  ;;  %v386_v8 = vmul.f32 %v762_v2, %v385_v5  ;;  %v391_v9 = vstv %s763_s27  ;;  %s1064_s18 = sld [smem:[#allocation4 + $0x3]]  ;;  %s1066_s19 = sld [smem:[#allocation4 + $0x4]]  ;;  %v402_v18 = vld [vmem:[%s1062_s14] ss:$8 sm:$0x3] }
  0x44   : > { %v397_v11 = vstv %s765_s29  ;;  %v392_v14 = vmul.f32 %v764_v6, %v391_v9  ;;  %v769_v21 = vld [vmem:[%s1062_s14 + $0x1] ss:$8 sm:$0x3]  ;;  %s1074_s20 = sld [smem:[#allocation4 + $0x5]]  ;;  %s1078_s24 = sld [smem:[#allocation4 + $0x6]] }
  0x45   : > { %v381_v13 = vadd.f32 %v380_v4, %v379_v7  ;;  %v398_v16 = vmul.f32 %v766_v10, %v397_v11  ;;  %v771_v27 = vld [vmem:[%s1062_s14 + $0x2] ss:$8 sm:$0x3]  ;;  %v773_v35 = vld [vmem:[%s1062_s14 + $0x3] ss:$8 sm:$0x3]  ;;  %s1115_s10 = scalar_lea.vmem %s1136_s6, %s1151_s21 }
  0x46   : > { %s780_s25 = sld [smem:[#allocation4 + $0x7]]  ;;  %v775_v42 = vld [vmem:[%s1062_s14 + $0x4] ss:$8 sm:$0x3]  ;;  %s787_s26 = sshll.u32 %s1151_s21, 2 }
  0x47   : > { %v387_v15 = vadd.f32 %v386_v8, %v381_v13  ;;  %v403_v22 = vstv %s401_s15  ;;  %v405_v23 = vstv %s1056_s11  ;;  %v777_v48 = vld [vmem:[%s1062_s14 + $0x5] ss:$8 sm:$0x3]  ;;  %v779_v53 = vld [vmem:[%s1062_s14 + $0x6] ss:$8 sm:$0x3]  ;;  %s370_s7 = scalar_lea.vmem %s1135_s5, %s787_s26 }
  0x48   : > { %v404_v25 = vmul.f32 %v403_v22, %v402_v18  ;;  %v410_v26 = vstv %s768_s16  ;;  %v416_v28 = vstv %s770_s17  ;;  %v781_v57 = vld [vmem:[%s1062_s14 + $0x7] ss:$8 sm:$0x3] }
  0x49   : > { %v393_v19 = vadd.f32 %v392_v14, %v387_v15  ;;  %v411_v29 = vmul.f32 %v769_v21, %v410_v26  ;;  %v422_v30 = vstv %s1064_s18  ;;  %v417_v36 = vmul.f32 %v771_v27, %v416_v28 }
  0x4a   : > { %v406_v34 = vadd.f32 %v405_v23, %v404_v25  ;;  %v428_v37 = vstv %s1066_s19  ;;  %v423_v45 = vmul.f32 %v773_v35, %v422_v30  ;;  %v434_v49 = vstv %s1074_s20 }
  0x4b   : > { %v399_v24 = vadd.f32 %v398_v16, %v393_v19  ;;  %v429_v52 = vmul.f32 %v775_v42, %v428_v37  ;;  %v440_v54 = vstv %s1078_s24  ;;  %v435_v56 = vmul.f32 %v777_v48, %v434_v49 }
  0x4c   : > { %v412_v44 = vadd.f32 %v411_v29, %v406_v34  ;;  %v446_v58 = vstv %s780_s25  ;;  %v441_v60 = vmul.f32 %v779_v53, %v440_v54  ;;  %v932_v16 = vmov 0.0  }
  0x4d   : > { %v453_v31 = vrot.slane %v399_v24, %v1068_v17  ;;  %v457_v32 = vrot.slane %v399_v24, %v1071_v20  ;;  %v498_v33 = vmul.f32 %v399_v24, %v399_v24  ;;  %v447_v62 = vmul.f32 %v781_v57, %v446_v58  ;;  %579 = vst [vmem:[%s1115_s10] sm:$0x1] %v932_v16 }
  0x4e   : > { %v418_v51 = vadd.f32 %v417_v36, %v412_v44 }
  0x4f   : > { %v486_v38 = vsel %vm471_vm0, %v453_v31, 0.0  ;;  %v487_v39 = vsel %vm471_vm0, %v457_v32, 0.0  ;;  %v503_v40 = vrot.slane %v498_v33, %v1068_v17  ;;  %v507_v41 = vrot.slane %v498_v33, %v1071_v20 }
  0x50   : > { %v488_v43 = vadd.f32 %v487_v39, %v486_v38  ;;  %v424_v55 = vadd.f32 %v423_v45, %v418_v51  ;;  %v559_v45 = vand.u32 127, %v450_v0 }
  0x51   : > { %v510_v46 = vsel %vm471_vm0, %v503_v40, 0.0  ;;  %v511_v47 = vsel %vm471_vm0, %v507_v41, 0.0 }
  0x52   : > { %489 = vadd.xlane.f32.xlu0 %v488_v43  ;;  %v512_v50 = vadd.f32 %v511_v47, %v510_v46  ;;  %v430_v59 = vadd.f32 %v429_v52, %v424_v55  ;;  %vm563_vm1 = vcmp.eq.s32.totalorder %v559_v45, 1  ;;  %vm560_vm2 = vcmp.eq.s32.totalorder %v559_v45, 0 }
  0x53   : > { %vm567_vm3 = vcmp.eq.s32.totalorder %v559_v45, 2  ;;  %vm571_vm4 = vcmp.eq.s32.totalorder %v559_v45, 3 }
  0x54   : > { %v436_v61 = vadd.f32 %v435_v56, %v430_v59  ;;  %v580_v56 = vld [vmem:[%s1115_s10] sm:$0x1] }
  0x56   : > { %513 = vadd.xlane.f32.xlu0 %v512_v50  ;;  %v442_v63 = vadd.f32 %v441_v60, %v436_v61 }
  0x58   : > { %v448_v1 = vadd.f32 %v447_v62, %v442_v63 }
  0x5a   : > { %v464_v2 = vrot.slane %v448_v1, %v1068_v17  ;;  %v468_v3 = vrot.slane %v448_v1, %v1071_v20  ;;  %v534_v4 = vmul.f32 %v448_v1, %v448_v1 }
  0x5c   : > { %v522_v5 = vsel %vm471_vm0, %v464_v2, 0.0  ;;  %v523_v6 = vsel %vm471_vm0, %v468_v3, 0.0  ;;  %v472_v7 = vsel %vm471_vm0, %v453_v31, %v464_v2  ;;  %v473_v8 = vsel %vm471_vm0, %v457_v32, %v468_v3 }
  0x5d   : > { %v524_v9 = vadd.f32 %v523_v6, %v522_v5  ;;  %v476_v10 = vcombine.low %v472_v7, %v473_v8  ;;  %v539_v11 = vrot.slane %v534_v4, %v1068_v17  ;;  %v543_v12 = vrot.slane %v534_v4, %v1071_v20 }
  0x5f   : > { %525 = vadd.xlane.f32.xlu1 %v524_v9  ;;  %782 = vst.sshfl [vmem:[%s370_s7] sm:$0x33 pattern:$0x76325410] %v476_v10  ;;  %v546_v13 = vsel %vm471_vm0, %v539_v11, 0.0  ;;  %v547_v14 = vsel %vm471_vm0, %v543_v12, 0.0 }
  0x60   : > { %v548_v15 = vadd.f32 %v547_v14, %v546_v13 }
  0x63   : > { %549 = vadd.xlane.f32.xlu1 %v548_v15 }
  0xdf   : > { %v490_v18 = vpop.xlane.xlu0 %489 }
  0xe0   : > { %v491_v17 = vrot.slane %v490_v18, 4 }
  0xe2   : > { %v492_v19 = vadd.f32 %v491_v17, %v490_v18 }
  0xe3   : > { %v514_v20 = vpop.xlane.xlu0 %513 }
  0xe4   : > { %v493_v21 = vrot.slane %v492_v19, 2  ;;  %v515_v22 = vrot.slane %v514_v20, 4 }
  0xe6   : > { %v516_v23 = vadd.f32 %v515_v22, %v514_v20  ;;  %v494_v24 = vadd.f32 %v493_v21, %v492_v19 }
  0xe8   : > { %v517_v25 = vrot.slane %v516_v23, 2  ;;  %v495_v26 = vrot.slane %v494_v24, 1 }
  0xea   : > { %v518_v27 = vadd.f32 %v517_v25, %v516_v23  ;;  %v496_v28 = vadd.f32 %v495_v26, %v494_v24 }
  0xec   : > { %788 = vpush %v496_v28  ;;  %v519_v29 = vrot.slane %v518_v27, 1  ;;  %v526_v31 = vpop.xlane.xlu1 %525 }
  0xed   : > { %v527_v32 = vrot.slane %v526_v31, 4 }
  0xee   : > { %v520_v30 = vadd.f32 %v519_v29, %v518_v27 }
  0xef   : > { %v528_v33 = vadd.f32 %v527_v32, %v526_v31 }
  0xf0   : > { %790 = vpush %v520_v30  ;;  %v550_v34 = vpop.xlane.xlu1 %549 }
  0xf1   : > { %v529_v35 = vrot.slane %v528_v33, 2  ;;  %v551_v36 = vrot.slane %v550_v34, 4 }
  0xf3   : > { %v552_v37 = vadd.f32 %v551_v36, %v550_v34  ;;  %v530_v38 = vadd.f32 %v529_v35, %v528_v33 }
  0xf5   : > { %v553_v39 = vrot.slane %v552_v37, 2  ;;  %v531_v40 = vrot.slane %v530_v38, 1 }
  0xf7   : > { %v554_v41 = vadd.f32 %v553_v39, %v552_v37  ;;  %v532_v42 = vadd.f32 %v531_v40, %v530_v38 }
  0xf9   : > { %792 = vpush %v532_v42  ;;  %v555_v43 = vrot.slane %v554_v41, 1 }
  0xfb   : > { %v556_v44 = vadd.f32 %v555_v43, %v554_v41 }
  0xfd   : > { %794 = vpush %v556_v44 }
 0x11d   : > { %s789_s21 = spop %788 }
 0x11e   : > { %v561_v47 = vstv %s789_s21 }
 0x11f   : > { %v562_v50 = vsel %vm560_vm2, %v561_v47, 0.0 }
 0x121   : > { %s791_s28 = spop %790 }
 0x122   : > { %v564_v46 = vstv %s791_s28 }
 0x123   : > { %v565_v48 = vsel %vm563_vm1, %v564_v46, 0.0 }
 0x124   : > { %v566_v52 = vadd.f32 %v565_v48, %v562_v50 }
 0x12a   : > { %s793_s11 = spop %792 }
 0x12b   : > { %v568_v49 = vstv %s793_s11 }
 0x12c   : > { %v569_v51 = vsel %vm567_vm3, %v568_v49, 0.0 }
 0x12d   : > { %v570_v53 = vadd.f32 %v569_v51, %v566_v52 }
 0x12e   : > { %s795_s12 = spop %794 }
 0x12f   : > { %v572_v54 = vstv %s795_s12 }
 0x130   : > { %v573_v55 = vsel %vm571_vm4, %v572_v54, 0.0 }
 0x131   : > { %v574_v0 = vadd.f32 %v573_v55, %v570_v53 }
 0x133   : > { %v581_v57 = vadd.f32 %v580_v56, %v574_v0 }
 0x135   : > { %582 = vst [vmem:[%s1115_s10] sm:$0x1] %v581_v57 }
 0x136 PF: > { %s19_s23 = sadd.s32 1, %s927_s23   ;;  %s1146_s21 = smov %s923_s22 }
 0x137   : > { %p16_p5 = scmp.ge.s32.totalorder %s19_s23, 4   ;;  %s1147_s22 = smov %s1149_s30 }
 0x139   :  { %18 = sbr.rel (!%p16_p5) target bundleno = 3 (0x3), region = 112 }
 0x140   :  { %625 = vsyncpa [#allocation3], 1 }
 0x141   :  { %627 = vsyncpa [#allocation3 + $0x1], 1 }
 0x142   :  { %628 = vsyncpa [#allocation5], 1 }

// kernel: attblock_forward.3
= control target key start
LH: loop header
LB: loop body
LE: loop exit
PB: predicated region body
PF: predicated region fallthrough
CT: control target
= control target key end

     0   :  { %8 = vsyncpa [#allocation3], 0  ;;  %s548_s12 = smov 0   ;;  %s550_s13 = smov 0   ;;  %s614_s0 = inlined_call_operand.vmem [shape: f32[6], index: 0, kind: input, shape index: {}]   ;;  %s615_s1 = inlined_call_operand.vmem [shape: f32[2,4,256], index: 1, kind: input, shape index: {}]   ;;  %s616_s2 = inlined_call_operand.vmem [shape: f32[2,2,256], index: 2, kind: input, shape index: {}]   ;;  %s617_s3 = inlined_call_operand.vmem [shape: f32[2,4,256], index: 3, kind: output, shape index: {}]  }
   0x1   :  { %s552_s14 = smov 0  }
   0x2 LB: > { %s420_s15 = sadd.s32 4294967295, %s525_s14   ;;  %s26_s16 = sadd.s32 1, %s521_s13  ;;  %s525_s14 = sphi %s552_s14, %s14_s14   ;;  %s521_s13 = sphi %s550_s13, %s621_s13   ;;  %s517_s12 = sphi %s548_s12, %s620_s12  }
   0x3   : > { %p28_p0 = scmp.ge.s32.totalorder %s26_s16, 2  ;;  %p422_p1 = scmp.ge.s32.totalorder %s525_s14, 1 }
   0x4   : > { %p136_p2 = scmp.lt.s32.totalorder %s525_s14, 3  ;;  %p573_p4 = scmp.eq.s32.totalorder %s420_s15, 0 }
   0x5   : > { %s623_s16 = smov (%p28_p0, %s26_s16), 0  ;;  %s149_s21 = sshll.u32 %s614_s0, 4  ;;  %s150_s21 = int_to_ptr.vmem [resolvable:$true] %s149_s21 }
   0x6   : > { %p569_p3 = pnand %p422_p1, %p136_p2  ;;  %s484_s22 = scalar_lea.vmem %s150_s21, 16 }
   0x7   : > { %p485_p7 = scmp.ne.s32.totalorder %s150_s21, %s484_s22  ;;  %p492_p11 = scmp.lt.s32.totalorder %s150_s21, %s150_s21 }
   0x8   : > { %p449_p5 = pneg %p569_p3  ;;  %p493_p12 = scmp.lt.s32.totalorder %s484_s22, %s484_s22 }
   0xa   : > { %p450_p6 = pnand %p573_p4, %p449_p5  ;;  %p494_p13 = por %p493_p12, %p492_p11 }
   0xc   : > { %p486_p8 = pneg %p450_p6 }
   0xe   : > { %p487_p9 = pnand %p486_p8, %p485_p7 }
  0x10   : > { %p488_p10 = pneg %p487_p9 }
  0x12   : > { %p495_p0 = pnand %p494_p13, %p488_p10 }
  0x14   : > { %498 = shalt.err (!%p495_p0)
}
  0x15   : > { %s527_s23 = smov [#allocation2]   ;;  %188 = sbr.rel (%p569_p3) target bundleno = 84 (0x54), region = 32 }
  0x16   : > { %452 = dma.vmem_to_smem (!%p450_p6), %s150_s21, 16, %s527_s23, [#allocation3]  }
  0x1c   : > { %512 = dma.done.wait (%p573_p4), [#allocation3], 16  }
  0x1d   : > { %514 = vsyncadd (%p573_p4), [#allocation3], 4294967280 }
  0x1e   : > { %194 = sfence }
  0x1f   : > { %p231_p1 = scmp.lt.s32.totalorder %s517_s12, 1  ;;  %s263_s24 = sld [smem:[#allocation2]]  ;;  %v291_v19 = vlaneseq }
  0x20   : > { %s434_s25 = sld [smem:[#allocation2 + $0x1]]  ;;  %s435_s26 = sld [smem:[#allocation2 + $0x2]] }
  0x21   : > { %s625_s12 = smov (!%p231_p1, %s517_s12), 1  ;;  %s436_s27 = sld [smem:[#allocation2 + $0x3]]  ;;  %v292_v20 = vshrl.u32 %v291_v19, 7 }
  0x22   : > { %s443_s28 = sshll.u32 %s625_s12, 2  ;;  %s437_s5 = sld [smem:[#allocation2 + $0x4]] }
  0x23   : > { %s248_s4 = scalar_lea.vmem %s616_s2, %s443_s28  ;;  %s438_s6 = sld [smem:[#allocation2 + $0x5]]  ;;  %v293_v21 = vsub.s32 0, %v292_v20  ;;  %v297_v22 = vsub.s32 1, %v292_v20 }
  0x24   : > { %v260_v0 = vld [vmem:[%s248_s4] ss:$2 sm:$0x3]  ;;  %v433_v1 = vld [vmem:[%s248_s4 + $0x1] ss:$2 sm:$0x3] }
  0x25   : > { %v264_v2 = vstv %s263_s24  ;;  %s442_s7 = sshll.u32 %s625_s12, 3 }
  0x26   : > { %v265_v3 = vmul.f32 %v264_v2, %v260_v0  ;;  %v267_v4 = vstv %s434_s25  ;;  %v270_v5 = vstv %s435_s26  ;;  %s238_s10 = scalar_lea.vmem %s615_s1, %s442_s7  ;;  %s258_s17 = scalar_lea.vmem %s617_s3, %s442_s7 }
  0x27   : > { %v271_v6 = vmul.f32 %v433_v1, %v270_v5  ;;  %v273_v8 = vstv %s436_s27  ;;  %v289_v26 = vld [vmem:[%s238_s10] sm:$0xff] }
  0x28   : > { %v268_v7 = vadd.f32 %v267_v4, %v265_v3  ;;  %v278_v11 = vstv %s437_s5 }
  0x29   : > { %v274_v9 = vadd.f32 %v273_v8, %v271_v6  ;;  %v281_v13 = vstv %s438_s6 }
  0x2b   : > { %v275_v10 = vadd.f32 %v274_v9, %v268_v7 }
  0x2d   : > { %v276_v12 = vmax.f32 %v275_v10, 0.0 }
  0x2f   : > { %v279_v14 = vmul.f32 %v278_v11, %v276_v12 }
  0x31   : > { %v282_v15 = vadd.f32 %v281_v13, %v279_v14 }
  0x33   : > { %v439_v16 = vmul.f32 -1.442695, %v282_v15 }
  0x35   : > { %480 = vpow2.f32 %v439_v16 }
  0x3f   : > { %v481_v17 = vpop.eup %480 }
  0x40   : > { %v286_v18 = vadd.f32 1.0, %v481_v17 }
  0x42   : > { %482 = vrcp.f32 %v286_v18 }
  0x4c   : > { %v483_v23 = vpop.eup %482 }
  0x4d   : > { %v294_v24 = vrot.slane %v483_v23, %v293_v21  ;;  %v298_v25 = vrot.slane %v483_v23, %v297_v22 }
  0x4f   : > { %v299_v27 = vcombine.low %v294_v24, %v298_v25 }
  0x51   : > { %v301_v28 = vmul.f32 %v299_v27, %v289_v26 }
  0x53   : > { %302 = vst [vmem:[%s258_s17] sm:$0xff] %v301_v28 }
  0x54 PF: > { %s14_s14 = sadd.s32 1, %s525_s14   ;;  %s620_s12 = smov %s521_s13 }
  0x55   : > { %p11_p2 = scmp.ge.s32.totalorder %s14_s14, 4   ;;  %s621_s13 = smov %s623_s16 }
  0x57   :  { %13 = sbr.rel (!%p11_p2) target bundleno = 2 (0x2), region = 71 }
  0x5e   :  { %333 = vsyncpa [#allocation3], 1 }
  0x5f   :  { %335 = vsyncpa [#allocation3 + $0x1], 1 }

</bundles_post_ra>
